<compile_context>
chip_gen: v7x
topology: tpu7x:2x2x1
jax: 0.10.0
libtpu: 0.0.40
codegen_flags: <defaults>
</compile_context>

<pallas_src>
import functools

import jax
import jax.numpy as jnp
from jax.experimental import pallas as pl
from jax.experimental.pallas import tpu as pltpu


def _round_up(x, m):
    return ((x + m - 1) // m) * m


def _voxel_scatter_kernel(tile_of, chunk_of, first_of, last_of, valid_of,
                          ids_ref, feats_ref, out_ref, acc_ref,
                          *, tv, w_pad, mm_dtype):
    """One work item of the flattened (split, work) grid.

    tile_of/chunk_of/first_of/last_of/valid_of: [S*w_pad] int32 SMEM work-list arrays.
    ids_ref:   [tn, 1]   int32  sorted compact voxel rank per point (sentinel = no voxel)
    feats_ref: [C+1, tn] mm_dtype point features transposed; last row = 1.0 (count)
    out_ref:   [C+1, tv] f32    lane-dense tile: rows 0..C-1 = mean features, row C = count
    acc_ref:   [C+1, tv] f32    VMEM accumulator, resident across a tile's work items
    """
    s = pl.program_id(0)
    w = pl.program_id(1)
    idx = s * w_pad + w
    t = tile_of[idx]

    @pl.when(first_of[idx] == 1)
    def _init():
        acc_ref[...] = jnp.zeros_like(acc_ref)

    @pl.when(valid_of[idx] == 1)
    def _accumulate():
        rel = ids_ref[...] - t * tv                                   # [tn, 1] int32
        lane = jax.lax.broadcasted_iota(jnp.int32, (1, tv), 1)        # [1, tv]
        onehot_t = (rel == lane).astype(mm_dtype)                     # [tn, tv]
        # sums[c, v] (and counts in the last row) in one MXU matmul, lane-dense output.
        acc_ref[...] += jnp.dot(feats_ref[...], onehot_t,
                                preferred_element_type=jnp.float32)

    @pl.when(last_of[idx] == 1)
    def _finalize():
        acc = acc_ref[...]
        c = acc.shape[0] - 1
        cnt = acc[c:c + 1, :]                                         # [1, tv]
        denom = jnp.maximum(cnt, 1.0)
        row = jax.lax.broadcasted_iota(jnp.int32, acc.shape, 0)
        # Mean for the feature rows, raw count in the last row (counts exact in f32).
        out_ref[...] = jnp.where(row < c, acc / denom, acc).astype(out_ref.dtype)


def voxel_scatter_mean(rank_sorted, feats_t_sorted, v_cap, *, tv, tn,
                       num_splits=2, mm_dtype=jnp.bfloat16):
    """Scatter-mean of rank-sorted point features into a compact padded voxel table.

    rank_sorted:    [N_pad, 1]   int32 sorted compact voxel ranks (sentinel >= v_cap)
    feats_t_sorted: [C+1, N_pad] f32   transposed sorted features, last row = 1.0
    Returns out_t:  [C+1, v_cap] f32   rows 0..C-1 = per-voxel mean features, row C = count
    """
    cplus1, n_pad = feats_t_sorted.shape
    assert n_pad % tn == 0 and v_cap % (tv * num_splits) == 0
    num_chunks = n_pad // tn
    num_tiles = v_cap // tv
    tps = num_tiles // num_splits                       # tiles per megacore split
    w_pad = num_chunks + tps                            # static bound on work items/split

    # --- per-voxel-tile [start, end) ranges of tn-sized sorted point chunks ---
    boundaries = jnp.arange(num_tiles + 1, dtype=jnp.int32) * tv
    pos = jnp.searchsorted(rank_sorted[:, 0], boundaries, side="left").astype(jnp.int32)
    starts, ends = pos[:-1], pos[1:]
    chunk_start = (starts // tn).astype(jnp.int32)
    chunk_end = jnp.where(ends > starts, (ends - 1) // tn + 1, chunk_start).astype(jnp.int32)

    # --- flattened ragged work list (one entry per (tile, chunk) pair; empty tiles get a
    #     dummy entry so their output rows are still zero-initialized) ---
    cs2 = chunk_start.reshape(num_splits, tps)
    ce2 = chunk_end.reshape(num_splits, tps)
    n_items = jnp.maximum(ce2 - cs2, 1)                               # [S, tps]
    cum = jnp.cumsum(n_items, axis=1)
    cum_ex = cum - n_items
    total = cum[:, -1]                                                # [S]
    w_row = jnp.arange(w_pad, dtype=jnp.int32)
    # tile owning work item w within its split = #{t : cum[t] <= w}
    tile_local = jnp.sum(cum[:, :, None] <= w_row[None, None, :], axis=1).astype(jnp.int32)
    tile_local = jnp.minimum(tile_local, tps - 1)
    valid = w_row[None, :] < total[:, None]
    off = w_row[None, :] - jnp.take_along_axis(cum_ex, tile_local, axis=1)
    t_cs = jnp.take_along_axis(cs2, tile_local, axis=1)
    t_ce = jnp.take_along_axis(ce2, tile_local, axis=1)
    t_n = jnp.take_along_axis(n_items, tile_local, axis=1)
    chunk_of = jnp.clip(t_cs + off, 0, num_chunks - 1)
    first_of = valid & (off == 0)
    last_of = valid & (off == t_n - 1)
    valid_of = valid & (t_ce > t_cs)
    tile_of = tile_local + (jnp.arange(num_splits, dtype=jnp.int32) * tps)[:, None]

    def as_smem(x):  # flatten to 1-D int32 (avoids 2-D SMEM row padding waste)
        return x.reshape(-1).astype(jnp.int32)

    def ids_map(s, w, tile_of, chunk_of, first_of, last_of, valid_of):
        return (chunk_of[s * w_pad + w], 0)

    def feats_map(s, w, tile_of, chunk_of, first_of, last_of, valid_of):
        return (0, chunk_of[s * w_pad + w])

    def out_map(s, w, tile_of, chunk_of, first_of, last_of, valid_of):
        return (0, tile_of[s * w_pad + w])

    return pl.pallas_call(
        functools.partial(_voxel_scatter_kernel, tv=tv, w_pad=w_pad, mm_dtype=mm_dtype),
        out_shape=jax.ShapeDtypeStruct((cplus1, v_cap), jnp.float32),
        grid_spec=pltpu.PrefetchScalarGridSpec(
            num_scalar_prefetch=5,
            grid=(num_splits, w_pad),
            in_specs=[pl.BlockSpec((tn, 1), ids_map),
                      pl.BlockSpec((cplus1, tn), feats_map)],
            out_specs=pl.BlockSpec((cplus1, tv), out_map),
            scratch_shapes=[pltpu.VMEM((cplus1, tv), jnp.float32)]),
        compiler_params=pltpu.CompilerParams(
            dimension_semantics=("parallel", "arbitrary"),
            vmem_limit_bytes=32 * 1024 * 1024),
    )(as_smem(tile_of), as_smem(chunk_of), as_smem(first_of), as_smem(last_of),
      as_smem(valid_of), rank_sorted, feats_t_sorted.astype(mm_dtype))


def _point_voxel_ids(points, batch_size, pc_range, voxel_size, grid_size):
    """Shared coordinate math: per-point features, linear voxel id, keep mask."""
    pc_range = jnp.asarray(pc_range, jnp.float32)
    voxel_size = jnp.asarray(voxel_size, jnp.float32)
    b_idx = points[:, 0].astype(jnp.int32)
    feats = points[:, 1:].astype(jnp.float32)
    x, y, z = feats[:, 0], feats[:, 1], feats[:, 2]

    keep = ((x >= pc_range[0]) & (x <= pc_range[3]) &
            (y >= pc_range[1]) & (y <= pc_range[4]) &
            (z >= pc_range[2]) & (z <= pc_range[5]) &
            (b_idx >= 0) & (b_idx < batch_size))

    X, Y, Z = int(grid_size[0]), int(grid_size[1]), int(grid_size[2])
    # Points exactly at pc_range max are kept by the reference and floor to the grid
    # extent, so the id space uses extents (X+1, Y+1, Z+1).
    XE, YE, ZE = X + 1, Y + 1, Z + 1
    cz = jnp.clip(((z - pc_range[2]) / voxel_size[2]).astype(jnp.int32), 0, ZE - 1)
    cy = jnp.clip(((y - pc_range[1]) / voxel_size[1]).astype(jnp.int32), 0, YE - 1)
    cx = jnp.clip(((x - pc_range[0]) / voxel_size[0]).astype(jnp.int32), 0, XE - 1)

    lin = ((b_idx * ZE + cz) * YE + cy) * XE + cx
    num_voxels = batch_size * ZE * YE * XE
    return feats, lin, keep, num_voxels, (XE, YE, ZE)


def dynamic_voxel_encoder(points, batch_size, pc_range, voxel_size, grid_size,
                          *, tv=512, tn=2048, num_splits=2, mm_dtype=jnp.bfloat16):
    """JAX/Pallas equivalent of DynamicVoxelEncoder.forward.

    points: [P, 1 + C] float32, column 0 = batch index, columns 1: = (x, y, z, ...).
    Returns voxel_features [V_cap, C], voxel_coords [V_cap, 4] (b, z, y, x), voxel_mask
    [V_cap] where V_cap >= #occupied voxels is a static cap; the first sum(mask) rows are
    the occupied voxels in torch.unique order (batch-major, then z, y, x).
    Tiling: tv in {256, 512, 1024} / tn in {1024, 2048, 4096} fit comfortably in VMEM on
    v5e/v6e/v7x with the bf16 one-hot; use mm_dtype=jnp.float32 for exact coordinate means.
    """
    feats, lin, keep, num_voxels, (XE, YE, ZE) = _point_voxel_ids(
        points, batch_size, pc_range, voxel_size, grid_size)
    p, c = feats.shape
    assert p >= 1

    # Sort points by linear voxel id; dropped points get a sentinel id and sort last.
    lin_sentinel = num_voxels
    lin_k = jnp.where(keep, lin, lin_sentinel).astype(jnp.int32)
    order = jnp.argsort(lin_k)
    lin_sorted = lin_k[order]
    feats_sorted = feats[order]
    keep_sorted = lin_sorted < lin_sentinel

    # Occupied-voxel compaction: rank = index among unique sorted voxel ids.
    is_new = jnp.concatenate(
        [jnp.ones((1,), jnp.bool_), lin_sorted[1:] != lin_sorted[:-1]])
    rank = jnp.cumsum(is_new.astype(jnp.int32)) - 1

    # Static cap on occupied voxels (<= #points and <= dense grid), padded to the tiling.
    v_cap = _round_up(max(min(num_voxels, p), 1), tv * num_splits)
    rank = jnp.where(keep_sorted, rank, v_cap).astype(jnp.int32)      # sentinel = v_cap

    # Per-rank linear voxel id (decode coords only for the compacted voxels).
    occ_lin = jnp.zeros((v_cap,), jnp.int32).at[rank].set(lin_sorted, mode="drop")

    # Fuse the per-voxel point count into the matmul: append a ones column (C -> C+1).
    feats_aug = jnp.concatenate([feats_sorted, jnp.ones((p, 1), jnp.float32)], axis=1)
    feats_aug = jnp.where(keep_sorted[:, None], feats_aug, 0.0)

    # Pad the point dim to a multiple of tn with sentinel ranks / zero features.
    n_pad = _round_up(p, tn)
    pad = n_pad - p
    rank_padded = jnp.concatenate(
        [rank, jnp.full((pad,), v_cap, jnp.int32)]).reshape(n_pad, 1)
    feats_padded = jnp.concatenate(
        [feats_aug, jnp.zeros((pad, c + 1), jnp.float32)], axis=0)
    feats_t = feats_padded.T                                          # [C+1, n_pad]

    out_t = voxel_scatter_mean(rank_padded, feats_t, v_cap, tv=tv, tn=tn,
                               num_splits=num_splits, mm_dtype=mm_dtype)

    # Layout plumbing back to the reference [V, C] orientation (O(occupied) after compaction).
    voxel_features = out_t[:c, :].T                                   # [V_cap, C]
    counts = out_t[c, :]
    voxel_mask = counts > 0.0

    # Decode per-rank linear id -> (batch, z, y, x), matching F.pad(coors, (1,0), value=i).
    vb = occ_lin // (ZE * YE * XE)
    rem = occ_lin % (ZE * YE * XE)
    vz = rem // (YE * XE)
    rem = rem % (YE * XE)
    vy = rem // XE
    vx = rem % XE
    voxel_coords = jnp.stack([vb, vz, vy, vx], axis=1)

    # TODO(synk): torch.unique returns a dynamically-sized voxel list; Pallas/TPU needs
    # static shapes, so rows beyond sum(voxel_mask) are zero padding - consumers should
    # gather/slice where voxel_mask.
    return voxel_features, voxel_coords, voxel_mask


if __name__ == "__main__":
    key = jax.random.PRNGKey(0)

    # Small deterministic config: num_point_features=4 (x, y, z, intensity).
    batch_size = 2
    num_point_features = 4
    point_cloud_range = (0.0, 0.0, 0.0, 4.0, 4.0, 2.0)
    voxel_size = (1.0, 1.0, 1.0)
    grid_size = (4, 4, 2)                                 # (X, Y, Z)

    P = 512
    k1, k2, k3, k4 = jax.random.split(key, 4)
    bcol = jax.random.randint(k1, (P, 1), 0, batch_size).astype(jnp.float32)
    xy = jax.random.uniform(k2, (P, 2), minval=-0.5, maxval=4.5)      # some out of range
    zz = jax.random.uniform(k3, (P, 1), minval=-0.5, maxval=2.5)      # some out of range
    intensity = jax.random.uniform(k4, (P, 1))
    points = jnp.concatenate([bcol, xy, zz, intensity], axis=1)       # [512, 5]

    # Pure-JAX dense scatter-mean reference.
    feats_r, lin_r, keep_r, V, (XE, YE, ZE) = _point_voxel_ids(
        points, batch_size, point_cloud_range, voxel_size, grid_size)
    C = feats_r.shape[1]

    def reference(mm_dtype):
        f = feats_r.astype(mm_dtype).astype(jnp.float32)
        f_aug = jnp.concatenate([f, jnp.ones((P, 1), jnp.float32)], axis=1)
        f_aug = jnp.where(keep_r[:, None], f_aug, 0.0)
        idx = jnp.where(keep_r, lin_r, V)
        dense = jnp.zeros((V + 1, C + 1), jnp.float32).at[idx].add(f_aug)[:V]
        cnt = dense[:, C]
        mean = dense[:, :C] / jnp.maximum(cnt[:, None], 1.0)
        return mean, cnt > 0.0

    # Small tiles so the test exercises multi-chunk work lists, megacore split, the bf16
    # MXU path, and an entirely-empty padded voxel tile.
    configs = [
        (jnp.float32, 128, 128, 2),
        (jnp.bfloat16, 128, 128, 2),
        (jnp.float32, 256, 128, 2),
    ]
    for mm_dtype, tv, tn, num_splits in configs:
        encoder = jax.jit(functools.partial(
            dynamic_voxel_encoder,
            batch_size=batch_size, pc_range=point_cloud_range,
            voxel_size=voxel_size, grid_size=grid_size,
            tv=tv, tn=tn, num_splits=num_splits, mm_dtype=mm_dtype))
        voxel_features, voxel_coords, voxel_mask = encoder(points)
        jax.block_until_ready((voxel_features, voxel_coords, voxel_mask))

        ref_mean, ref_mask = reference(mm_dtype)
        ref_occ = jnp.nonzero(ref_mask)[0]                # sorted occupied linear ids
        n_occ = int(ref_occ.shape[0])

        assert voxel_features.shape[1] == num_point_features
        assert voxel_coords.shape == (voxel_features.shape[0], 4)
        assert n_occ > 0
        assert int(jnp.sum(voxel_mask)) == n_occ
        assert bool(jnp.all(voxel_mask[:n_occ]))          # occupied rows are a prefix
        lin_k = (((voxel_coords[:n_occ, 0] * ZE + voxel_coords[:n_occ, 1]) * YE
                  + voxel_coords[:n_occ, 2]) * XE + voxel_coords[:n_occ, 3])
        assert bool(jnp.all(lin_k == ref_occ))            # torch.unique ordering
        assert bool(jnp.allclose(voxel_features[:n_occ], ref_mean[ref_occ],
                                 atol=1e-4, rtol=1e-4))
        assert bool(jnp.allclose(voxel_features[n_occ:], 0.0))

    print("KERNEL_OK")
</pallas_src>

<mosaic_0001>
module attributes {stable_mosaic.version = 11 : i64} {
  func.func @_voxel_scatter_kernel(%arg0: i32, %arg1: i32, %arg2: memref<10xi32, #tpu.memory_space<smem>>, %arg3: memref<10xi32, #tpu.memory_space<smem>>, %arg4: memref<10xi32, #tpu.memory_space<smem>>, %arg5: memref<10xi32, #tpu.memory_space<smem>>, %arg6: memref<10xi32, #tpu.memory_space<smem>>, %arg7: memref<128x1xi32, #tpu.memory_space<vmem>>, %arg8: memref<5x128xf32, #tpu.memory_space<vmem>>, %arg9: memref<5x128xf32, #tpu.memory_space<vmem>>, %arg10: memref<5x128xf32, #tpu.memory_space<vmem>>) attributes {dimension_semantics = [#tpu.dimension_semantics<parallel>, #tpu.dimension_semantics<arbitrary>], iteration_bounds = array<i64: 2, 5>, scalar_prefetch = 5 : i64, scratch_operands = 1 : i64, tpu.core_type = #tpu.core_type<tc>, window_params = [{transform_indices = @transform_0, window_bounds = array<i64: 128, 1>}, {transform_indices = @transform_1, window_bounds = array<i64: 5, 128>}, {transform_indices = @transform_2, window_bounds = array<i64: 5, 128>}]} {
    %c5_i32 = arith.constant 5 : i32
    %0 = arith.muli %arg0, %c5_i32 : i32
    %1 = arith.addi %0, %arg1 : i32
    %2 = arith.index_cast %1 : i32 to index
    %3 = memref.load %arg2[%2] : memref<10xi32, #tpu.memory_space<smem>>
    %4 = arith.index_cast %1 : i32 to index
    %5 = memref.load %arg4[%4] : memref<10xi32, #tpu.memory_space<smem>>
    %c1_i32 = arith.constant 1 : i32
    %6 = arith.cmpi eq, %5, %c1_i32 : i32
    %7 = arith.extui %6 : i1 to i32
    %c0_i32 = arith.constant 0 : i32
    %8 = arith.cmpi ne, %7, %c0_i32 : i32
    scf.if %8 {
      %cst = arith.constant 0.000000e+00 : f32
      %19 = vector.broadcast %cst : f32 to vector<5x128xf32>
      %c0 = arith.constant 0 : index
      %c0_4 = arith.constant 0 : index
      %20 = vector.load %arg10[%c0, %c0_4] : memref<5x128xf32, #tpu.memory_space<vmem>>, vector<5x128xf32>
      tpu.vector_store %arg10[%c0, %c0_4], %19 {strides = array<i32>} : memref<5x128xf32, #tpu.memory_space<vmem>>, vector<5x128xf32>,
    } else {
    }
    %9 = arith.index_cast %1 : i32 to index
    %10 = memref.load %arg6[%9] : memref<10xi32, #tpu.memory_space<smem>>
    %c1_i32_0 = arith.constant 1 : i32
    %11 = arith.cmpi eq, %10, %c1_i32_0 : i32
    %12 = arith.extui %11 : i1 to i32
    %c0_i32_1 = arith.constant 0 : i32
    %13 = arith.cmpi ne, %12, %c0_i32_1 : i32
    scf.if %13 {
      %c0 = arith.constant 0 : index
      %c0_4 = arith.constant 0 : index
      %19 = vector.load %arg7[%c0, %c0_4] : memref<128x1xi32, #tpu.memory_space<vmem>>, vector<128x1xi32>
      %c128_i32 = arith.constant 128 : i32
      %20 = arith.muli %3, %c128_i32 : i32
      %21 = vector.broadcast %20 : i32 to vector<128x1xi32>
      %22 = arith.subi %19, %21 : vector<128x1xi32>
      %23 = tpu.iota {dimensions = array<i32: 1>} : vector<1x128xi32>
      %24 = vector.broadcast %22 : vector<128x1xi32> to vector<128x128xi32>
      %25 = vector.broadcast %23 : vector<1x128xi32> to vector<128x128xi32>
      %26 = arith.cmpi eq, %24, %25 : vector<128x128xi32>
      %27 = arith.extui %26 : vector<128x128xi1> to vector<128x128xi32>
      %28 = arith.sitofp %27 : vector<128x128xi32> to vector<128x128xf32>
      %c0_5 = arith.constant 0 : index
      %c0_6 = arith.constant 0 : index
      %29 = vector.load %arg10[%c0_5, %c0_6] : memref<5x128xf32, #tpu.memory_space<vmem>>, vector<5x128xf32>
      %c0_7 = arith.constant 0 : index
      %c0_8 = arith.constant 0 : index
      %30 = vector.load %arg8[%c0_7, %c0_8] : memref<5x128xf32, #tpu.memory_space<vmem>>, vector<5x128xf32>
      %cst = arith.constant dense<0.000000e+00> : vector<5x128xf32>
      %31 = tpu.matmul %30, %28, %cst {dimension_numbers = #tpu.dot_dimension_numbers<[1], [0], [0], [1], [0, 0, 1, 1], [], []>} : vector<5x128xf32>, vector<128x128xf32>, vector<5x128xf32> -> vector<5x128xf32>
      %32 = arith.addf %29, %31 : vector<5x128xf32>
      %c0_9 = arith.constant 0 : index
      %c0_10 = arith.constant 0 : index
      %33 = vector.load %arg10[%c0_9, %c0_10] : memref<5x128xf32, #tpu.memory_space<vmem>>, vector<5x128xf32>
      tpu.vector_store %arg10[%c0_9, %c0_10], %32 {strides = array<i32>} : memref<5x128xf32, #tpu.memory_space<vmem>>, vector<5x128xf32>,
    } else {
    }
    %14 = arith.index_cast %1 : i32 to index
    %15 = memref.load %arg5[%14] : memref<10xi32, #tpu.memory_space<smem>>
    %c1_i32_2 = arith.constant 1 : i32
    %16 = arith.cmpi eq, %15, %c1_i32_2 : i32
    %17 = arith.extui %16 : i1 to i32
    %c0_i32_3 = arith.constant 0 : i32
    %18 = arith.cmpi ne, %17, %c0_i32_3 : i32
    scf.if %18 {
      %c0 = arith.constant 0 : index
      %c0_4 = arith.constant 0 : index
      %19 = vector.load %arg10[%c0, %c0_4] : memref<5x128xf32, #tpu.memory_space<vmem>>, vector<5x128xf32>
      %20 = vector.extract_strided_slice %19 {offsets = [4, 0], sizes = [1, 128], strides = [1, 1]} : vector<5x128xf32> to vector<1x128xf32>
      %cst = arith.constant 1.000000e+00 : f32
      %21 = vector.broadcast %cst : f32 to vector<1x128xf32>
      %22 = arith.maximumf %20, %21 : vector<1x128xf32>
      %23 = tpu.iota {dimensions = array<i32: 0>} : vector<5x128xi32>
      %c4_i32 = arith.constant 4 : i32
      %24 = vector.broadcast %c4_i32 : i32 to vector<5x128xi32>
      %25 = arith.cmpi slt, %23, %24 : vector<5x128xi32>
      %26 = vector.broadcast %22 : vector<1x128xf32> to vector<5x128xf32>
      %27 = arith.divf %19, %26 : vector<5x128xf32>
      %28 = arith.select %25, %27, %19 : vector<5x128xi1>, vector<5x128xf32>
      %c0_5 = arith.constant 0 : index
      %c0_6 = arith.constant 0 : index
      %29 = vector.load %arg9[%c0_5, %c0_6] : memref<5x128xf32, #tpu.memory_space<vmem>>, vector<5x128xf32>
      tpu.vector_store %arg9[%c0_5, %c0_6], %28 {strides = array<i32>} : memref<5x128xf32, #tpu.memory_space<vmem>>, vector<5x128xf32>,
    } else {
    }
    return
  }
  func.func @transform_0(%arg0: i32, %arg1: i32, %arg2: memref<10xi32, #tpu.memory_space<smem>>, %arg3: memref<10xi32, #tpu.memory_space<smem>>, %arg4: memref<10xi32, #tpu.memory_space<smem>>, %arg5: memref<10xi32, #tpu.memory_space<smem>>, %arg6: memref<10xi32, #tpu.memory_space<smem>>) -> (i32, i32) {
    %c5_i32 = arith.constant 5 : i32
    %0 = arith.muli %arg0, %c5_i32 : i32
    %1 = arith.addi %0, %arg1 : i32
    %2 = arith.index_cast %1 : i32 to index
    %3 = memref.load %arg3[%2] : memref<10xi32, #tpu.memory_space<smem>>
    %c0_i32 = arith.constant 0 : i32
    %c0_i32_0 = arith.constant 0 : i32
    return %3, %c0_i32 : i32, i32
  }
  func.func @transform_1(%arg0: i32, %arg1: i32, %arg2: memref<10xi32, #tpu.memory_space<smem>>, %arg3: memref<10xi32, #tpu.memory_space<smem>>, %arg4: memref<10xi32, #tpu.memory_space<smem>>, %arg5: memref<10xi32, #tpu.memory_space<smem>>, %arg6: memref<10xi32, #tpu.memory_space<smem>>) -> (i32, i32) {
    %c5_i32 = arith.constant 5 : i32
    %0 = arith.muli %arg0, %c5_i32 : i32
    %1 = arith.addi %0, %arg1 : i32
    %2 = arith.index_cast %1 : i32 to index
    %3 = memref.load %arg3[%2] : memref<10xi32, #tpu.memory_space<smem>>
    %c0_i32 = arith.constant 0 : i32
    %c0_i32_0 = arith.constant 0 : i32
    return %c0_i32, %3 : i32, i32
  }
  func.func @transform_2(%arg0: i32, %arg1: i32, %arg2: memref<10xi32, #tpu.memory_space<smem>>, %arg3: memref<10xi32, #tpu.memory_space<smem>>, %arg4: memref<10xi32, #tpu.memory_space<smem>>, %arg5: memref<10xi32, #tpu.memory_space<smem>>, %arg6: memref<10xi32, #tpu.memory_space<smem>>) -> (i32, i32) {
    %c5_i32 = arith.constant 5 : i32
    %0 = arith.muli %arg0, %c5_i32 : i32
    %1 = arith.addi %0, %arg1 : i32
    %2 = arith.index_cast %1 : i32 to index
    %3 = memref.load %arg2[%2] : memref<10xi32, #tpu.memory_space<smem>>
    %c0_i32 = arith.constant 0 : i32
    %c0_i32_0 = arith.constant 0 : i32
    return %c0_i32, %3 : i32, i32
  }
}

</mosaic_0001>

<bundles_post_ra>
// kernel: custom-call.8
= control target key start
LH: loop header
LB: loop body
LE: loop exit
PB: predicated region body
PF: predicated region fallthrough
CT: control target
= control target key end

     0   :  { %s6_s0 = inlined_call_operand.vmem [shape: u32[3], index: 0, kind: output, shape index: {}]  }

</bundles_post_ra>
